<compile_context>
chip_gen: v7x
topology: tpu7x:2x2x1
jax: 0.10.0
libtpu: 0.0.40
codegen_flags: <defaults>
</compile_context>

<pallas_src>
import jax
import jax.numpy as jnp
from jax.experimental import pallas as pl
from jax.experimental.pallas import tpu as pltpu

STATE_DIM = 16
ACTION_DIM = 2
HIDDEN1 = 300
HIDDEN2 = 200
MAX_SPEED = 1.0       # max_action[0]
MAX_ANGULAR = 0.5     # max_action[1]
BN_EPS = 1e-5

# Lane-aligned (multiple-of-128) padded feature sizes.
H1_PAD = 384
H2_PAD = 256
Z_PAD = 128           # layer-3 matmul lane width (MXU minimum); only 2 lanes are real


def _round_up(n, m):
    return ((n + m - 1) // m) * m


def _tpu_generation():
    try:
        kind = jax.devices()[0].device_kind.lower()
    except Exception:
        return None
    for g in (7, 6, 5, 4):
        if f"v{g}" in kind:
            return g
    return None


def _batch_tiling(B):
    """Pick (batch_tile, vmem_limit_bytes) for the current TPU generation."""
    gen = _tpu_generation()
    if gen is not None and gen >= 7:
        # v7x: 64 MiB physical VMEM, 2 TensorCores -> smaller tile, >=2 grid steps.
        tb_max, vmem_limit = 2048, 48 << 20
        min_steps = 2 if B > 128 else 1
    elif gen in (5, 6):
        # v5e / v6e: 128 MiB physical VMEM -> big tiles to amortize step overhead.
        tb_max, vmem_limit, min_steps = 4096, 96 << 20, 1
    else:
        tb_max, vmem_limit, min_steps = 1024, 32 << 20, 1
    n_tiles = max(pl.cdiv(max(B, 1), tb_max), min_steps)
    tb = _round_up(pl.cdiv(max(B, 1), n_tiles), 16)   # 16: bf16 sublane packing
    tb = min(tb, _round_up(tb_max, 16))
    return tb, vmem_limit


# --------------------------------------------------------------------------
# Kernel: one batch tile of the full 3-layer MLP + head.
# --------------------------------------------------------------------------
def _actor_kernel(x_ref, w1_ref, b1_ref, w2_ref, b2_ref, w3_ref, b3_ref, o_ref):
    # x arrives pre-cast to bf16; weights are bf16 with BN folded in; f32 acc.
    x = x_ref[...]

    # ---- layer 1: fused matmul + bias + ReLU + bf16 downcast ----
    h1 = jnp.maximum(
        jnp.dot(x, w1_ref[...], preferred_element_type=jnp.float32) + b1_ref[...],
        0.0).astype(jnp.bfloat16)

    # ---- layer 2: fused matmul + bias + ReLU + bf16 downcast ----
    h2 = jnp.maximum(
        jnp.dot(h1, w2_ref[...], preferred_element_type=jnp.float32) + b2_ref[...],
        0.0).astype(jnp.bfloat16)

    # ---- layer 3: matmul + bias (128-lane slab; only 2 lanes are real) ----
    z = jnp.dot(h2, w3_ref[...], preferred_element_type=jnp.float32) + b3_ref[...]

    # Head: lane 0 -> clamp(sigmoid(z), 0, max_speed),
    #       lane 1 -> clamp(tanh(z), -max_angular, max_angular).
    # Single tanh pass: sigmoid(z) == 0.5 * (1 + tanh(z / 2)).
    col = jax.lax.broadcasted_iota(jnp.int32, z.shape, 1)
    is_speed = col == 0
    t = jnp.tanh(jnp.where(is_speed, 0.5 * z, z))
    speed = jnp.clip(0.5 * (1.0 + t), 0.0, MAX_SPEED)
    angular = jnp.clip(t, -MAX_ANGULAR, MAX_ANGULAR)
    head = jnp.where(is_speed, speed, angular)

    # Store only the useful columns (narrow writeback; no padded slab).
    o_ref[...] = head[:, :ACTION_DIM].astype(o_ref.dtype)


# --------------------------------------------------------------------------
# Wrapper: batch tiling, resident weights, narrow output.
# --------------------------------------------------------------------------
def actor_forward(x, folded_params):
    """x: (B, STATE_DIM).  folded_params: (w1,b1,w2,b2,w3,b3).  Returns (B, 2) f32."""
    w1, b1, w2, b2, w3, b3 = folded_params
    B = x.shape[0]
    tb, vmem_limit = _batch_tiling(B)
    b_pad = _round_up(max(B, 1), tb)

    x = x.astype(jnp.bfloat16)
    if b_pad != B:
        x = jnp.pad(x, ((0, b_pad - B), (0, 0)))
    grid = (b_pad // tb,)

    batch_map = lambda i: (i, 0)
    const_map = lambda i: (0, 0)

    in_specs = [
        pl.BlockSpec((tb, STATE_DIM), batch_map),          # x (streamed, bf16)
        pl.BlockSpec((STATE_DIM, H1_PAD), const_map),      # w1 (resident)
        pl.BlockSpec((1, H1_PAD), const_map),              # b1
        pl.BlockSpec((H1_PAD, H2_PAD), const_map),         # w2
        pl.BlockSpec((1, H2_PAD), const_map),              # b2
        pl.BlockSpec((H2_PAD, Z_PAD), const_map),          # w3
        pl.BlockSpec((1, Z_PAD), const_map),               # b3
    ]

    param_bytes = sum(int(p.size) * p.dtype.itemsize for p in (w1, b1, w2, b2, w3, b3))
    cost = pl.CostEstimate(
        flops=2 * b_pad * (STATE_DIM * H1_PAD + H1_PAD * H2_PAD + H2_PAD * Z_PAD),
        transcendentals=b_pad * Z_PAD,
        bytes_accessed=int(x.size) * 2 + b_pad * ACTION_DIM * 4 + param_bytes,
    )

    out = pl.pallas_call(
        _actor_kernel,
        out_shape=jax.ShapeDtypeStruct((b_pad, ACTION_DIM), jnp.float32),
        grid=grid,
        in_specs=in_specs,
        out_specs=pl.BlockSpec((tb, ACTION_DIM), batch_map),
        compiler_params=pltpu.CompilerParams(
            dimension_semantics=("parallel",),
            vmem_limit_bytes=vmem_limit),
        cost_estimate=cost,
    )(x, w1, b1, w2, b2, w3, b3)
    return out if b_pad == B else out[:B]


# --------------------------------------------------------------------------
# Parameter construction (PyTorch-equivalent raw params) + BN folding/padding.
# --------------------------------------------------------------------------
def _init_linear(key, fan_in, fan_out):
    """PyTorch nn.Linear default init: U(-1/sqrt(fan_in), 1/sqrt(fan_in))."""
    kw, kb = jax.random.split(key)
    bound = 1.0 / jnp.sqrt(float(fan_in))
    w = jax.random.uniform(kw, (fan_out, fan_in), jnp.float32, -bound, bound)  # (out, in)
    b = jax.random.uniform(kb, (fan_out,), jnp.float32, -bound, bound)
    return w, b


def _init_bn(key, feat):
    """Deterministic eval-mode BatchNorm1d params."""
    k1, k2, k3 = jax.random.split(key, 3)
    gamma = 1.0 + 0.1 * jax.random.normal(k1, (feat,), jnp.float32)
    beta = 0.1 * jax.random.normal(k2, (feat,), jnp.float32)
    running_mean = 0.05 * jax.random.normal(k3, (feat,), jnp.float32)
    running_var = 1.2 * jnp.ones((feat,), jnp.float32)
    return gamma, beta, running_mean, running_var


def make_raw_params(key):
    ks = jax.random.split(key, 6)
    return {
        "l1": _init_linear(ks[0], STATE_DIM, HIDDEN1),
        "bn1": _init_bn(ks[1], HIDDEN1),
        "l2": _init_linear(ks[2], HIDDEN1, HIDDEN2),
        "bn2": _init_bn(ks[3], HIDDEN2),
        "l3": _init_linear(ks[4], HIDDEN2, ACTION_DIM),
        "bn3": _init_bn(ks[5], ACTION_DIM),
    }


def _fold_layer(linear, bn, in_pad, out_pad, weight_dtype):
    """Fold eval-mode BN into the linear layer and pad to lane-aligned shapes."""
    w, b = linear                       # w: (out, in), b: (out,)
    gamma, beta, mean, var = bn
    scale = gamma * jax.lax.rsqrt(var + BN_EPS)
    shift = beta - mean * scale
    w_f = w.T * scale[None, :]          # (in, out): x @ w_f == BN-scaled Linear
    b_f = b * scale + shift
    in_dim, out_dim = w_f.shape
    w_f = jnp.pad(w_f, ((0, in_pad - in_dim), (0, out_pad - out_dim)))
    b_f = jnp.pad(b_f, ((0, out_pad - out_dim),))
    return w_f.astype(weight_dtype), b_f.reshape(1, out_pad).astype(jnp.float32)


def fold_params(raw, weight_dtype=jnp.bfloat16):
    w1, b1 = _fold_layer(raw["l1"], raw["bn1"], STATE_DIM, H1_PAD, weight_dtype)
    w2, b2 = _fold_layer(raw["l2"], raw["bn2"], H1_PAD, H2_PAD, weight_dtype)
    w3, b3 = _fold_layer(raw["l3"], raw["bn3"], H2_PAD, Z_PAD, weight_dtype)
    return (w1, b1, w2, b2, w3, b3)


def reference_forward(x, raw):
    """Pure-JAX f32 reference of the PyTorch forward (eval-mode BN)."""
    def bn(z, p):
        gamma, beta, mean, var = p
        return (z - mean) * jax.lax.rsqrt(var + BN_EPS) * gamma + beta

    def linear(z, p):
        w, b = p
        return z @ w.T + b

    h1 = jax.nn.relu(bn(linear(x, raw["l1"]), raw["bn1"]))
    h2 = jax.nn.relu(bn(linear(h1, raw["l2"]), raw["bn2"]))
    z = bn(linear(h2, raw["l3"]), raw["bn3"])
    x1 = jnp.clip(jax.nn.sigmoid(z[:, 0]), 0.0, MAX_SPEED)
    x2 = jnp.clip(jnp.tanh(z[:, 1]), -MAX_ANGULAR, MAX_ANGULAR)
    return jnp.stack([x1, x2], axis=1)


# TODO(synk): the custom `BatchNorm` class in the source repo is not shown;
# eval-mode affine BatchNorm1d semantics are assumed (training-mode batch
# statistics / running-stat updates are not implemented).

if __name__ == "__main__":
    key = jax.random.PRNGKey(0)
    kx, kp = jax.random.split(key)
    batch = 8
    x = jax.random.normal(kx, (batch, STATE_DIM), jnp.float32)

    raw = make_raw_params(kp)
    folded = fold_params(raw)

    out = actor_forward(x, folded)
    out = jax.block_until_ready(out)

    assert out.shape == (batch, ACTION_DIM)
    ref = reference_forward(x, raw)
    # bf16 matmul inputs -> loose-but-meaningful tolerance (outputs are in [-1, 1]).
    assert bool(jnp.allclose(out, ref, atol=3e-2)), (out, ref)
    assert bool(jnp.all(out[:, 0] >= 0.0) & jnp.all(out[:, 0] <= MAX_SPEED))
    assert bool(jnp.all(jnp.abs(out[:, 1]) <= MAX_ANGULAR))
    print("KERNEL_OK")
</pallas_src>

<mosaic_0001>
module attributes {stable_mosaic.version = 11 : i64} {
  func.func @_actor_kernel(%arg0: i32, %arg1: memref<16x16xbf16, #tpu.memory_space<vmem>>, %arg2: memref<16x384xbf16, #tpu.memory_space<vmem>>, %arg3: memref<1x384xf32, #tpu.memory_space<vmem>>, %arg4: memref<384x256xbf16, #tpu.memory_space<vmem>>, %arg5: memref<1x256xf32, #tpu.memory_space<vmem>>, %arg6: memref<256x128xbf16, #tpu.memory_space<vmem>>, %arg7: memref<1x128xf32, #tpu.memory_space<vmem>>, %arg8: memref<16x2xf32, #tpu.memory_space<vmem>>) attributes {dimension_semantics = [#tpu.dimension_semantics<parallel>], iteration_bounds = array<i64: 1>, scalar_prefetch = 0 : i64, scratch_operands = 0 : i64, tpu.core_type = #tpu.core_type<tc>, window_params = [{transform_indices = @transform_0, window_bounds = array<i64: 16, 16>}, {pipeline_mode = #tpu.pipeline_mode<synchronous>, transform_indices = @transform_1, window_bounds = array<i64: 16, 384>}, {pipeline_mode = #tpu.pipeline_mode<synchronous>, transform_indices = @transform_2, window_bounds = array<i64: 1, 384>}, {pipeline_mode = #tpu.pipeline_mode<synchronous>, transform_indices = @transform_3, window_bounds = array<i64: 384, 256>}, {pipeline_mode = #tpu.pipeline_mode<synchronous>, transform_indices = @transform_4, window_bounds = array<i64: 1, 256>}, {pipeline_mode = #tpu.pipeline_mode<synchronous>, transform_indices = @transform_5, window_bounds = array<i64: 256, 128>}, {pipeline_mode = #tpu.pipeline_mode<synchronous>, transform_indices = @transform_6, window_bounds = array<i64: 1, 128>}, {transform_indices = @transform_7, window_bounds = array<i64: 16, 2>}]} {
    %c0 = arith.constant 0 : index
    %c0_0 = arith.constant 0 : index
    %0 = vector.load %arg1[%c0, %c0_0] : memref<16x16xbf16, #tpu.memory_space<vmem>>, vector<16x16xbf16>
    %c0_1 = arith.constant 0 : index
    %c0_2 = arith.constant 0 : index
    %1 = vector.load %arg2[%c0_1, %c0_2] : memref<16x384xbf16, #tpu.memory_space<vmem>>, vector<16x384xbf16>
    %cst = arith.constant dense<0.000000e+00> : vector<16x384xf32>
    %2 = tpu.matmul %0, %1, %cst {dimension_numbers = #tpu.dot_dimension_numbers<[1], [0], [0], [1], [0, 0, 1, 1], [], []>} : vector<16x16xbf16>, vector<16x384xbf16>, vector<16x384xf32> -> vector<16x384xf32>
    %c0_3 = arith.constant 0 : index
    %c0_4 = arith.constant 0 : index
    %3 = vector.load %arg3[%c0_3, %c0_4] : memref<1x384xf32, #tpu.memory_space<vmem>>, vector<1x384xf32>
    %4 = vector.broadcast %3 : vector<1x384xf32> to vector<16x384xf32>
    %5 = arith.addf %2, %4 : vector<16x384xf32>
    %cst_5 = arith.constant 0.000000e+00 : f32
    %6 = vector.broadcast %cst_5 : f32 to vector<16x384xf32>
    %7 = arith.maximumf %5, %6 : vector<16x384xf32>
    %8 = arith.truncf %7 : vector<16x384xf32> to vector<16x384xbf16>
    %c0_6 = arith.constant 0 : index
    %c0_7 = arith.constant 0 : index
    %9 = vector.load %arg4[%c0_6, %c0_7] : memref<384x256xbf16, #tpu.memory_space<vmem>>, vector<384x256xbf16>
    %cst_8 = arith.constant dense<0.000000e+00> : vector<16x256xf32>
    %10 = tpu.matmul %8, %9, %cst_8 {dimension_numbers = #tpu.dot_dimension_numbers<[1], [0], [0], [1], [0, 0, 1, 1], [], []>} : vector<16x384xbf16>, vector<384x256xbf16>, vector<16x256xf32> -> vector<16x256xf32>
    %c0_9 = arith.constant 0 : index
    %c0_10 = arith.constant 0 : index
    %11 = vector.load %arg5[%c0_9, %c0_10] : memref<1x256xf32, #tpu.memory_space<vmem>>, vector<1x256xf32>
    %12 = vector.broadcast %11 : vector<1x256xf32> to vector<16x256xf32>
    %13 = arith.addf %10, %12 : vector<16x256xf32>
    %cst_11 = arith.constant 0.000000e+00 : f32
    %14 = vector.broadcast %cst_11 : f32 to vector<16x256xf32>
    %15 = arith.maximumf %13, %14 : vector<16x256xf32>
    %16 = arith.truncf %15 : vector<16x256xf32> to vector<16x256xbf16>
    %c0_12 = arith.constant 0 : index
    %c0_13 = arith.constant 0 : index
    %17 = vector.load %arg6[%c0_12, %c0_13] : memref<256x128xbf16, #tpu.memory_space<vmem>>, vector<256x128xbf16>
    %cst_14 = arith.constant dense<0.000000e+00> : vector<16x128xf32>
    %18 = tpu.matmul %16, %17, %cst_14 {dimension_numbers = #tpu.dot_dimension_numbers<[1], [0], [0], [1], [0, 0, 1, 1], [], []>} : vector<16x256xbf16>, vector<256x128xbf16>, vector<16x128xf32> -> vector<16x128xf32>
    %c0_15 = arith.constant 0 : index
    %c0_16 = arith.constant 0 : index
    %19 = vector.load %arg7[%c0_15, %c0_16] : memref<1x128xf32, #tpu.memory_space<vmem>>, vector<1x128xf32>
    %20 = vector.broadcast %19 : vector<1x128xf32> to vector<16x128xf32>
    %21 = arith.addf %18, %20 : vector<16x128xf32>
    %22 = tpu.iota {dimensions = array<i32: 1>} : vector<16x128xi32>
    %c0_i32 = arith.constant 0 : i32
    %23 = vector.broadcast %c0_i32 : i32 to vector<16x128xi32>
    %24 = arith.cmpi eq, %22, %23 : vector<16x128xi32>
    %cst_17 = arith.constant 5.000000e-01 : f32
    %25 = vector.broadcast %cst_17 : f32 to vector<16x128xf32>
    %26 = arith.mulf %25, %21 : vector<16x128xf32>
    %27 = arith.select %24, %26, %21 : vector<16x128xi1>, vector<16x128xf32>
    %28 = math.tanh %27 : vector<16x128xf32>
    %cst_18 = arith.constant 1.000000e+00 : f32
    %29 = vector.broadcast %cst_18 : f32 to vector<16x128xf32>
    %30 = arith.addf %29, %28 : vector<16x128xf32>
    %cst_19 = arith.constant 5.000000e-01 : f32
    %31 = vector.broadcast %cst_19 : f32 to vector<16x128xf32>
    %32 = arith.mulf %31, %30 : vector<16x128xf32>
    %cst_20 = arith.constant 0.000000e+00 : f32
    %cst_21 = arith.constant 1.000000e+00 : f32
    %33 = vector.broadcast %cst_20 : f32 to vector<16x128xf32>
    %34 = arith.maximumf %33, %32 : vector<16x128xf32>
    %35 = vector.broadcast %cst_21 : f32 to vector<16x128xf32>
    %36 = arith.minimumf %35, %34 : vector<16x128xf32>
    %cst_22 = arith.constant -5.000000e-01 : f32
    %cst_23 = arith.constant 5.000000e-01 : f32
    %37 = vector.broadcast %cst_22 : f32 to vector<16x128xf32>
    %38 = arith.maximumf %37, %28 : vector<16x128xf32>
    %39 = vector.broadcast %cst_23 : f32 to vector<16x128xf32>
    %40 = arith.minimumf %39, %38 : vector<16x128xf32>
    %41 = arith.select %24, %36, %40 : vector<16x128xi1>, vector<16x128xf32>
    %42 = vector.extract_strided_slice %41 {offsets = [0, 0], sizes = [16, 2], strides = [1, 1]} : vector<16x128xf32> to vector<16x2xf32>
    %c0_24 = arith.constant 0 : index
    %c0_25 = arith.constant 0 : index
    %43 = vector.load %arg8[%c0_24, %c0_25] : memref<16x2xf32, #tpu.memory_space<vmem>>, vector<16x2xf32>
    tpu.vector_store %arg8[%c0_24, %c0_25], %42 {strides = array<i32>} : memref<16x2xf32, #tpu.memory_space<vmem>>, vector<16x2xf32>,
    return
  }
  func.func @transform_0(%arg0: i32) -> (i32, i32) {
    %c0_i32 = arith.constant 0 : i32
    %c0_i32_0 = arith.constant 0 : i32
    return %arg0, %c0_i32 : i32, i32
  }
  func.func @transform_1(%arg0: i32) -> (i32, i32) {
    %c0_i32 = arith.constant 0 : i32
    %c0_i32_0 = arith.constant 0 : i32
    %c0_i32_1 = arith.constant 0 : i32
    return %c0_i32, %c0_i32_0 : i32, i32
  }
  func.func @transform_2(%arg0: i32) -> (i32, i32) {
    %c0_i32 = arith.constant 0 : i32
    %c0_i32_0 = arith.constant 0 : i32
    %c0_i32_1 = arith.constant 0 : i32
    return %c0_i32, %c0_i32_0 : i32, i32
  }
  func.func @transform_3(%arg0: i32) -> (i32, i32) {
    %c0_i32 = arith.constant 0 : i32
    %c0_i32_0 = arith.constant 0 : i32
    %c0_i32_1 = arith.constant 0 : i32
    return %c0_i32, %c0_i32_0 : i32, i32
  }
  func.func @transform_4(%arg0: i32) -> (i32, i32) {
    %c0_i32 = arith.constant 0 : i32
    %c0_i32_0 = arith.constant 0 : i32
    %c0_i32_1 = arith.constant 0 : i32
    return %c0_i32, %c0_i32_0 : i32, i32
  }
  func.func @transform_5(%arg0: i32) -> (i32, i32) {
    %c0_i32 = arith.constant 0 : i32
    %c0_i32_0 = arith.constant 0 : i32
    %c0_i32_1 = arith.constant 0 : i32
    return %c0_i32, %c0_i32_0 : i32, i32
  }
  func.func @transform_6(%arg0: i32) -> (i32, i32) {
    %c0_i32 = arith.constant 0 : i32
    %c0_i32_0 = arith.constant 0 : i32
    %c0_i32_1 = arith.constant 0 : i32
    return %c0_i32, %c0_i32_0 : i32, i32
  }
  func.func @transform_7(%arg0: i32) -> (i32, i32) {
    %c0_i32 = arith.constant 0 : i32
    %c0_i32_0 = arith.constant 0 : i32
    return %arg0, %c0_i32 : i32, i32
  }
}

</mosaic_0001>

<bundles_post_ra>
// kernel: tpu_custom_call.1
= control target key start
LH: loop header
LB: loop body
LE: loop exit
PB: predicated region body
PF: predicated region fallthrough
CT: control target
= control target key end

     0   :  { %12 = vsyncpa [#allocation3], 0  ;;  %s1280_s0 = inlined_call_operand.hbm [shape: bf16[16,16], index: 0, kind: input, shape index: {}]   ;;  %s1281_s1 = inlined_call_operand.hbm [shape: bf16[16,384], index: 1, kind: input, shape index: {}]   ;;  %s1282_s2 = inlined_call_operand.vmem [shape: f32[1,384], index: 2, kind: input, shape index: {}]   ;;  %s1283_s3 = inlined_call_operand.hbm [shape: bf16[384,256], index: 3, kind: input, shape index: {}]   ;;  %s1284_s4 = inlined_call_operand.vmem [shape: f32[1,256], index: 4, kind: input, shape index: {}]   ;;  %s1285_s5 = inlined_call_operand.hbm [shape: bf16[256,128], index: 5, kind: input, shape index: {}]   ;;  %s1286_s6 = inlined_call_operand.vmem [shape: f32[1,128], index: 6, kind: input, shape index: {}]   ;;  %s1287_s7 = inlined_call_operand.vmem [shape: f32[16,2], index: 7, kind: output, shape index: {}]  }
   0x1   :  { %13 = vsyncpa [#allocation5], 0 }
   0x2   :  { %14 = vsyncpa [#allocation8], 0  ;;  %s1139_s24 = smov [#allocation4]   ;;  %s1045_s28 = scalar_lea.hbm %s1281_s1, 384 }
   0x3   :  { %s32_s25 = sshll.u32 %s1139_s24, 4  ;;  %p1046_p0 = scmp.ne.s32.totalorder %s1281_s1, %s1045_s28  ;;  %s33_s25 = int_to_ptr.vmem [resolvable:$true] %s32_s25 }
   0x4   :  { %p1049_p1 = scmp.lt.u32.totalorder %s1045_s28, %s1281_s1 }
   0x6   :  { %p1051_p2 = pnand %p1049_p1, %p1046_p0 }
   0x8   :  { %1054 = shalt.err (!%p1051_p2)
}
   0x9   :  { %s1055_s10 = scalar_lea.vmem %s33_s25, 384  ;;  %p1060_p4 = scmp.lt.s32.totalorder %s33_s25, %s33_s25 }
   0xa   :  { %p1056_p3 = scmp.ne.s32.totalorder %s33_s25, %s1055_s10  ;;  %p1061_p5 = scmp.lt.s32.totalorder %s1055_s10, %s1055_s10 }
   0xc   :  { %p1062_p6 = por %p1061_p5, %p1060_p4 }
   0xe   :  { %p1063_p7 = pnand %p1062_p6, %p1056_p3 }
  0x10   :  { %1066 = shalt.err (!%p1063_p7)
}
  0x11   :  { %s1140_s11 = smov 192   ;;  %s1141_s12 = smov 12  }
  0x12   :  { %38 = dma.hbm_to_vmem [thread:$0]  %s1281_s1, 384, %s33_s25, [#allocation5], %s1140_s11, %s1140_s11, %s1141_s12  }
  0x13   :  { %s1142_s15 = smov [#allocation2]   ;;  %s1067_s19 = scalar_lea.hbm %s1280_s0, 128 }
  0x14   :  { %s20_s16 = sshll.u32 %s1142_s15, 4  ;;  %p1068_p8 = scmp.ne.s32.totalorder %s1280_s0, %s1067_s19  ;;  %s21_s16 = int_to_ptr.vmem [resolvable:$true] %s20_s16 }
  0x15   :  { %p1071_p9 = scmp.lt.u32.totalorder %s1067_s19, %s1280_s0 }
  0x17   :  { %p1073_p10 = pnand %p1071_p9, %p1068_p8 }
  0x19   :  { %1076 = shalt.err (!%p1073_p10)
}
  0x1a   :  { %s1077_s24 = scalar_lea.vmem %s21_s16, 128  ;;  %p1082_p12 = scmp.lt.s32.totalorder %s21_s16, %s21_s16 }
  0x1b   :  { %p1078_p11 = scmp.ne.s32.totalorder %s21_s16, %s1077_s24  ;;  %p1083_p13 = scmp.lt.s32.totalorder %s1077_s24, %s1077_s24 }
  0x1d   :  { %p1084_p0 = por %p1083_p13, %p1082_p12 }
  0x1f   :  { %p1085_p1 = pnand %p1084_p0, %p1078_p11 }
  0x21   :  { %1088 = shalt.err (!%p1085_p1)
}
  0x22   :  { %s1143_s1 = smov 64   ;;  %s1144_s25 = smov 4  }
  0x23   :  { %26 = dma.hbm_to_vmem [thread:$0]  %s1280_s0, 128, %s21_s16, [#allocation3], %s1143_s1, %s1143_s1, %s1144_s25  }
  0x24   :  { %s1145_s28 = smov [#allocation6]   ;;  %s1089_s9 = scalar_lea.hbm %s1283_s3, 6144 }
  0x25   :  { %s46_s29 = sshll.u32 %s1145_s28, 4  ;;  %p1090_p2 = scmp.ne.s32.totalorder %s1283_s3, %s1089_s9  ;;  %s47_s29 = int_to_ptr.vmem [resolvable:$true] %s46_s29 }
  0x26   :  { %p1093_p3 = scmp.lt.u32.totalorder %s1089_s9, %s1283_s3 }
  0x28   :  { %p1095_p4 = pnand %p1093_p3, %p1090_p2 }
  0x2a   :  { %1098 = shalt.err (!%p1095_p4)
}
  0x2b   :  { %s1099_s14 = scalar_lea.vmem %s47_s29, 6144  ;;  %p1104_p6 = scmp.lt.s32.totalorder %s47_s29, %s47_s29 }
  0x2c   :  { %p1100_p5 = scmp.ne.s32.totalorder %s47_s29, %s1099_s14  ;;  %p1105_p7 = scmp.lt.s32.totalorder %s1099_s14, %s1099_s14 }
  0x2e   :  { %p1106_p8 = por %p1105_p7, %p1104_p6 }
  0x30   :  { %p1107_p9 = pnand %p1106_p8, %p1100_p5 }
  0x32   :  { %1110 = shalt.err (!%p1107_p9)
}
  0x33   :  { %s1146_s0 = smov 128   ;;  %s1147_s15 = smov 8  }
  0x34   :  { %52 = dma.hbm_to_vmem [thread:$0]  %s1283_s3, 6144, %s47_s29, [#allocation5], %s1146_s0, %s1146_s0, %s1147_s15  }
  0x35   :  { %s1148_s18 = smov [#allocation7]   ;;  %s1111_s22 = scalar_lea.hbm %s1285_s5, 2048 }
  0x36   :  { %s60_s19 = sshll.u32 %s1148_s18, 4  ;;  %p1112_p10 = scmp.ne.s32.totalorder %s1285_s5, %s1111_s22  ;;  %s61_s19 = int_to_ptr.vmem [resolvable:$true] %s60_s19 }
  0x37   :  { %p1115_p11 = scmp.lt.u32.totalorder %s1111_s22, %s1285_s5 }
  0x39   :  { %p1117_p12 = pnand %p1115_p11, %p1112_p10 }
  0x3b   :  { %1120 = shalt.err (!%p1117_p12)
}
  0x3c   :  { %s1121_s28 = scalar_lea.vmem %s61_s19, 2048  ;;  %p1126_p0 = scmp.lt.s32.totalorder %s61_s19, %s61_s19 }
  0x3d   :  { %p1122_p13 = scmp.ne.s32.totalorder %s61_s19, %s1121_s28  ;;  %p1127_p1 = scmp.lt.s32.totalorder %s1121_s28, %s1121_s28 }
  0x3f   :  { %p1128_p2 = por %p1127_p1, %p1126_p0 }
  0x41   :  { %p1129_p3 = pnand %p1128_p2, %p1122_p13 }
  0x43   :  { %1132 = shalt.err (!%p1129_p3)
}
  0x44   :  { %66 = dma.hbm_to_vmem [thread:$0]  %s1285_s5, 2048, %s61_s19, [#allocation8], %s1143_s1, %s1143_s1, %s1144_s25  }
  0x45   :  { %1133 = dma.done.wait [#allocation3], 128  }
  0x46   :  { %1134 = vsyncadd [#allocation3], 4294967168 }
  0x47   :  { %1135 = dma.done.wait [#allocation5], 6528  }
  0x48   :  { %1136 = vsyncadd [#allocation5], 4294960768 }
  0x49   :  { %1137 = dma.done.wait [#allocation8], 2048  }
  0x4a   :  { %1138 = vsyncadd [#allocation8], 4294965248  ;;  %v1149_v0 = vmov 0.0   ;;  %vm1150_vm0 = vmmov 0   ;;  %v1151_v1 = vmov 0   ;;  %v952_v5 = vld [vmem:[#allocation2] sm:$0xff]   ;;  %v90_v55 = vlaneseq }
  0x4b   :  { %921 = vmatprep.subr.bf16.mxu1 %v1149_v0  ;;  %923 = vmatprep.mubr.msk.bf16.mxu1 %vm1150_vm0, %v1149_v0  ;;  %v948_v2 = vld [vmem:[#allocation4 + $0x4] ss:$12 sps:$4 sm:$0xff]   ;;  %v950_v3 = vld [vmem:[#allocation4 + $0x8] ss:$12 sps:$4 sm:$0xff]   ;;  %v951_v4 = vld [vmem:[#allocation4] ss:$12 sps:$4 sm:$0xff]  }
  0x4c   :  { %162 = vmatprep.mubr.bf16.mxu0 %v1151_v1  ;;  %130 = vmatprep.subr.bf16.mxu0 %v948_v2  ;;  %vm126_vm1 = vcmask 130048   ;;  %v953_v6 = vld [vmem:[#allocation6] ss:$8 sps:$4 sm:$0xff]   ;;  %v955_v7 = vld [vmem:[#allocation6 + $0x4] ss:$8 sps:$4 sm:$0xff]   ;;  %v1247_v56 = vshrl.u32 %v90_v55, 7 }
  0x4d   :  { %922 = vmatpush3.bf16.msra.mxu1 %v950_v3  ;;  %131 = vmatpush1.bf16.msra.mxu0 %v951_v4  ;;  %v958_v8 = vld [vmem:[#allocation6 + $0x14] ss:$8 sps:$4 sm:$0xff]   ;;  %v956_v9 = vld [vmem:[#allocation6 + $0x10] ss:$8 sps:$4 sm:$0xff]   ;;  %v961_v10 = vld [vmem:[#allocation6 + $0x24] ss:$8 sps:$4 sm:$0xff]  }
  0x4e   :  { %523 = vmatprep.subr.bf16.mxu0 %v955_v7  ;;  %v959_v11 = vld [vmem:[#allocation6 + $0x20] ss:$8 sps:$4 sm:$0xff]   ;;  %v964_v12 = vld [vmem:[#allocation6 + $0x34] ss:$8 sps:$4 sm:$0xff]   ;;  %v979_v14 = vld [vmem:[#allocation6 + $0x104] ss:$8 sps:$4 sm:$0xff]  }
  0x4f   :  { %v977_v13 = vld [vmem:[#allocation6 + $0x100] ss:$8 sps:$4 sm:$0xff]   ;;  %v962_v15 = vld [vmem:[#allocation6 + $0x30] ss:$8 sps:$4 sm:$0xff]   ;;  %v967_v16 = vld [vmem:[#allocation6 + $0x44] ss:$8 sps:$4 sm:$0xff]   ;;  %566 = vmatprep.subr.bf16.mxu1 %v979_v14 }
  0x50   :  { %924 = vmatmul.mubr.msk.bf16.vlgmr.msra.gmra.mrb[0].mxu1 %vm126_vm1, %v952_v5  ;;  %828 = vmatmul.mubr.msk.bf16.vlgmr.msra.gmra.mrb[0].mxu0 %vm126_vm1, %v952_v5  ;;  %v985_v17 = vld [vmem:[#allocation6 + $0x114] ss:$8 sps:$4 sm:$0xff]   ;;  %v983_v18 = vld [vmem:[#allocation6 + $0x110] ss:$8 sps:$4 sm:$0xff]   ;;  %v965_v19 = vld [vmem:[#allocation6 + $0x40] ss:$8 sps:$4 sm:$0xff]  }
  0x51   :  { %598 = vmatprep.mubr.bf16.mxu1 %v1151_v1  ;;  %524 = vmatpush1.bf16.msra.mxu0 %v953_v6  ;;  %v991_v20 = vld [vmem:[#allocation6 + $0x124] ss:$8 sps:$4 sm:$0xff]   ;;  %v970_v21 = vld [vmem:[#allocation6 + $0x54] ss:$8 sps:$4 sm:$0xff]   ;;  %v989_v22 = vld [vmem:[#allocation6 + $0x120] ss:$8 sps:$4 sm:$0xff]  }
  0x52   :  { %525 = vmatprep.subr.bf16.mxu0 %v958_v8  ;;  %567 = vmatpush1.bf16.msra.mxu1 %v977_v13  ;;  %v997_v23 = vld [vmem:[#allocation6 + $0x134] ss:$8 sps:$4 sm:$0xff]   ;;  %v968_v24 = vld [vmem:[#allocation6 + $0x50] ss:$8 sps:$4 sm:$0xff]   ;;  %v973_v25 = vld [vmem:[#allocation6 + $0x64] ss:$8 sps:$4 sm:$0xff]  }
  0x53   :  { %568 = vmatprep.subr.bf16.mxu1 %v985_v17  ;;  %v995_v26 = vld [vmem:[#allocation6 + $0x130] ss:$8 sps:$4 sm:$0xff]   ;;  %v1003_v27 = vld [vmem:[#allocation6 + $0x144] ss:$8 sps:$4 sm:$0xff]   ;;  %v971_v28 = vld [vmem:[#allocation6 + $0x60] ss:$8 sps:$4 sm:$0xff]  }
  0x54   :  { %v976_v29 = vld [vmem:[#allocation6 + $0x74] ss:$8 sps:$4 sm:$0xff]   ;;  %v1001_v30 = vld [vmem:[#allocation6 + $0x140] ss:$8 sps:$4 sm:$0xff]   ;;  %v974_v32 = vld [vmem:[#allocation6 + $0x70] ss:$8 sps:$4 sm:$0xff]  }
  0x55   :  { %526 = vmatpush1.bf16.msra.mxu0 %v956_v9  ;;  %v1009_v31 = vld [vmem:[#allocation6 + $0x154] ss:$8 sps:$4 sm:$0xff]   ;;  %v982_v33 = vld [vmem:[#allocation6 + $0x84] ss:$8 sps:$4 sm:$0xff]   ;;  %v1007_v34 = vld [vmem:[#allocation6 + $0x150] ss:$8 sps:$4 sm:$0xff]  }
  0x56   :  { %527 = vmatprep.subr.bf16.mxu0 %v961_v10  ;;  %569 = vmatpush1.bf16.msra.mxu1 %v983_v18  ;;  %v980_v35 = vld [vmem:[#allocation6 + $0x80] ss:$8 sps:$4 sm:$0xff]   ;;  %v988_v36 = vld [vmem:[#allocation6 + $0x94] ss:$8 sps:$4 sm:$0xff]   ;;  %v986_v37 = vld [vmem:[#allocation6 + $0x90] ss:$8 sps:$4 sm:$0xff]  }
  0x57   :  { %570 = vmatprep.subr.bf16.mxu1 %v991_v20  ;;  %v994_v38 = vld [vmem:[#allocation6 + $0xa4] ss:$8 sps:$4 sm:$0xff]   ;;  %v992_v39 = vld [vmem:[#allocation6 + $0xa0] ss:$8 sps:$4 sm:$0xff]   ;;  %v1000_v40 = vld [vmem:[#allocation6 + $0xb4] ss:$8 sps:$4 sm:$0xff]  }
  0x58   :  { %v998_v41 = vld [vmem:[#allocation6 + $0xb0] ss:$8 sps:$4 sm:$0xff]   ;;  %v1006_v42 = vld [vmem:[#allocation6 + $0xc4] ss:$8 sps:$4 sm:$0xff]   ;;  %v1004_v43 = vld [vmem:[#allocation6 + $0xc0] ss:$8 sps:$4 sm:$0xff]  }
  0x59   :  { %528 = vmatpush1.bf16.msra.mxu0 %v959_v11  ;;  %v1012_v44 = vld [vmem:[#allocation6 + $0xd4] ss:$8 sps:$4 sm:$0xff]   ;;  %v1010_v45 = vld [vmem:[#allocation6 + $0xd0] ss:$8 sps:$4 sm:$0xff]   ;;  %v1015_v46 = vld [vmem:[#allocation6 + $0x164] ss:$8 sps:$4 sm:$0xff]  }
  0x5a   :  { %529 = vmatprep.subr.bf16.mxu0 %v964_v12  ;;  %571 = vmatpush1.bf16.msra.mxu1 %v989_v22  ;;  %v1013_v47 = vld [vmem:[#allocation6 + $0x160] ss:$8 sps:$4 sm:$0xff]   ;;  %v1018_v48 = vld [vmem:[#allocation6 + $0xe4] ss:$8 sps:$4 sm:$0xff]   ;;  %v1021_v50 = vld [vmem:[#allocation6 + $0x174] ss:$8 sps:$4 sm:$0xff]  }
  0x5b   :  { %572 = vmatprep.subr.bf16.mxu1 %v997_v23  ;;  %v1016_v49 = vld [vmem:[#allocation6 + $0xe0] ss:$8 sps:$4 sm:$0xff]   ;;  %v1019_v51 = vld [vmem:[#allocation6 + $0x170] ss:$8 sps:$4 sm:$0xff]   ;;  %v1024_v52 = vld [vmem:[#allocation6 + $0xf4] ss:$8 sps:$4 sm:$0xff]  }
  0x5c   :  { %v1022_v53 = vld [vmem:[#allocation6 + $0xf0] ss:$8 sps:$4 sm:$0xff]   ;;  %v1025_v54 = vld [vmem:[#allocation7 + $0x40] sm:$0xff]   ;;  %v100_v57 = vsub.s32 2, %v1247_v56  ;;  %v92_v59 = vsub.s32 0, %v1247_v56  ;;  %v96_v60 = vsub.s32 1, %v1247_v56 }
  0x5d   :  { %530 = vmatpush1.bf16.msra.mxu0 %v962_v15  ;;  %v88_v58 = vld [vmem:[%s1282_s2] sm:$0x7]  ;;  %v1027_v22 = vld [vmem:[#allocation7 + $0x48] sm:$0xff]   ;;  %vm814_vm3 = vcmask 15360  }
  0x5e   :  { %531 = vmatprep.subr.bf16.mxu0 %v967_v16  ;;  %573 = vmatpush1.bf16.msra.mxu1 %v995_v26  ;;  %v101_v61 = vrot.slane %v88_v58, %v100_v57  ;;  %v93_v62 = vrot.slane %v88_v58, %v92_v59  ;;  %v97_v63 = vrot.slane %v88_v58, %v96_v60  ;;  %v1026_v18 = vld [vmem:[#allocation7] sm:$0xff]   ;;  %v1029_v26 = vld [vmem:[#allocation7 + $0x50] sm:$0xff]  }
  0x5f   :  { %574 = vmatprep.subr.bf16.mxu1 %v1003_v27  ;;  %v1030_v27 = vld [vmem:[#allocation7 + $0x10] sm:$0xff]  }
  0x61   :  { %532 = vmatpush1.bf16.msra.mxu0 %v965_v19 }
  0x62   :  { %533 = vmatprep.subr.bf16.mxu0 %v970_v21  ;;  %575 = vmatpush1.bf16.msra.mxu1 %v1001_v30  ;;  %v1033_v30 = vld [vmem:[#allocation7 + $0x60] sm:$0xff]  }
  0x63   :  { %576 = vmatprep.subr.bf16.mxu1 %v1009_v31  ;;  %v1034_v31 = vld [vmem:[#allocation7 + $0x20] sm:$0xff]  }
  0x65   :  { %534 = vmatpush1.bf16.msra.mxu0 %v968_v24 }
  0x66   :  { %535 = vmatprep.subr.bf16.mxu0 %v973_v25  ;;  %577 = vmatpush1.bf16.msra.mxu1 %v1007_v34  ;;  %v1028_v25 = vld [vmem:[#allocation7 + $0x8] sm:$0xff]   ;;  %v1037_v34 = vld [vmem:[#allocation7 + $0x70] sm:$0xff]  }
  0x67   :  { %578 = vmatprep.subr.bf16.mxu1 %v1015_v46 }
  0x69   :  { %536 = vmatpush1.bf16.msra.mxu0 %v971_v28  ;;  %v1031_v28 = vld [vmem:[#allocation7 + $0x58] sm:$0xff]  }
  0x6a   :  { %537 = vmatprep.subr.bf16.mxu0 %v976_v29  ;;  %579 = vmatpush1.bf16.msra.mxu1 %v1013_v47  ;;  %v1032_v29 = vld [vmem:[#allocation7 + $0x18] sm:$0xff]  }
  0x6b   :  { %580 = vmatprep.subr.bf16.mxu1 %v1021_v50 }
  0x6d   :  { %538 = vmatpush1.bf16.msra.mxu0 %v974_v32  ;;  %v1035_v32 = vld [vmem:[#allocation7 + $0x68] sm:$0xff]  }
  0x6e   :  { %539 = vmatprep.subr.bf16.mxu0 %v982_v33  ;;  %581 = vmatpush1.bf16.msra.mxu1 %v1019_v51  ;;  %v1036_v33 = vld [vmem:[#allocation7 + $0x28] sm:$0xff]  }
  0x6f   :  { %899 = vmatprep.subr.bf16.mxu1 %v1025_v54 }
  0x71   :  { %540 = vmatpush1.bf16.msra.mxu0 %v980_v35  ;;  %v1038_v35 = vld [vmem:[#allocation7 + $0x30] sm:$0xff]  }
  0x72   :  { %541 = vmatprep.subr.bf16.mxu0 %v988_v36  ;;  %v1039_v36 = vld [vmem:[#allocation7 + $0x78] sm:$0xff]  }
  0x75   :  { %542 = vmatpush1.bf16.msra.mxu0 %v986_v37  ;;  %v1040_v37 = vld [vmem:[#allocation7 + $0x38] sm:$0xff]  }
  0x76   :  { %543 = vmatprep.subr.bf16.mxu0 %v994_v38  ;;  %v271_v38 = vld [vmem:[%s1284_s4] sm:$0x3] }
  0x79   :  { %544 = vmatpush1.bf16.msra.mxu0 %v992_v39 }
  0x7a   :  { %545 = vmatprep.subr.bf16.mxu0 %v1000_v40  ;;  %v276_v40 = vrot.slane %v271_v38, %v92_v59 }
  0x7d   :  { %546 = vmatpush1.bf16.msra.mxu0 %v998_v41 }
  0x7e   :  { %547 = vmatprep.subr.bf16.mxu0 %v1006_v42  ;;  %v280_v42 = vrot.slane %v271_v38, %v96_v60 }
  0x81   :  { %548 = vmatpush1.bf16.msra.mxu0 %v1004_v43 }
  0x82   :  { %549 = vmatprep.subr.bf16.mxu0 %v1012_v44 }
  0x85   :  { %550 = vmatpush1.bf16.msra.mxu0 %v1010_v45 }
  0x86   :  { %551 = vmatprep.subr.bf16.mxu0 %v1018_v48 }
  0x89   :  { %552 = vmatpush1.bf16.msra.mxu0 %v1016_v49 }
  0x8a   :  { %553 = vmatprep.subr.bf16.mxu0 %v1024_v52 }
  0x8d   :  { %554 = vmatpush1.bf16.msra.mxu0 %v1022_v53 }
 0x123   :  { %v207_v0 = vpop.f32.mrb[0].mxu1  ;;  %v164_v2 = vpop.f32.mrb[0].mxu0 }
 0x124   :  { %v208_v1 = vadd.f32 %v207_v0, %v101_v61  ;;  %v925_v3 = vpop.f32.mrb[1].mxu1  ;;  %v165_v4 = vadd.f32 %v164_v2, %v93_v62  ;;  %v166_v5 = vpop.f32.mrb[1].mxu0 }
 0x125   :  { %v210_v6 = vpop.f32.mrb[2].mxu1  ;;  %v167_v8 = vadd.f32 %v166_v5, %v97_v63  ;;  %v168_v10 = vpop.f32.mrb[2].mxu0  ;;  %v792_v3 = vand.u32 127, %v90_v55 }
 0x126   :  { %v216_v7 = vmax.f32 %v208_v1, 0.0  ;;  %v211_v9 = vadd.f32 %v210_v6, %v101_v61  ;;  %v926_v11 = vpop.f32.mrb[3].mxu1  ;;  %v169_v12 = vadd.f32 %v168_v10, %v93_v62  ;;  %v170_v13 = vpop.f32.mrb[3].mxu0  ;;  %v214_v16 = vmax.f32 %v165_v4, 0.0  ;;  %v878_v1 = vld [vmem:[%s1286_s6] ss:$0 sm:$0xff] }
 0x127   :  { %v171_v15 = vadd.f32 %v170_v13, %v97_v63  ;;  %v215_v19 = vmax.f32 %v167_v8, 0.0  ;;  %vm793_vm2 = vcmp.eq.s32.totalorder %v792_v3, 0 }
 0x128   :  { %v219_v14 = vmax.f32 %v211_v9, 0.0  ;;  %v217_v17 = vmax.f32 %v169_v12, 0.0 }
 0x129   :  { %v218_v21 = vmax.f32 %v171_v15, 0.0 }
 0x12a   :  { %v222_v20 = vpack.c.bf16 %v219_v14, %v216_v7  ;;  %v220_v23 = vpack.c.bf16 %v217_v17, %v214_v16 }
 0x12b   :  { %v221_v24 = vpack.c.bf16 %v218_v21, %v215_v19 }
 0x12c   :  { %599 = vmatmul.mubr.bf16.vlgmr.msra.gmra.mrb[4].mxu1 %v222_v20 }
 0x12d   :  { %900 = vmatpush3.bf16.msra.mxu1 %v1026_v18  ;;  %555 = vmatprep.mubr.bf16.mxu0 %v221_v24 }
 0x12e   :  { %901 = vmatprep.subr.bf16.mxu1 %v1027_v22  ;;  %556 = vmatmul.mubr.bf16.vlgmr.msra.gmra.mrb[4].mxu0 %v220_v23 }
 0x131   :  { %902 = vmatpush3.bf16.msra.mxu1 %v1028_v25 }
 0x132   :  { %903 = vmatprep.subr.bf16.mxu1 %v1029_v26 }
 0x135   :  { %904 = vmatpush3.bf16.msra.mxu1 %v1030_v27 }
 0x136   :  { %905 = vmatprep.subr.bf16.mxu1 %v1031_v28 }
 0x139   :  { %906 = vmatpush3.bf16.msra.mxu1 %v1032_v29 }
 0x13a   :  { %907 = vmatprep.subr.bf16.mxu1 %v1033_v30 }
 0x13d   :  { %908 = vmatpush3.bf16.msra.mxu1 %v1034_v31 }
 0x13e   :  { %909 = vmatprep.subr.bf16.mxu1 %v1035_v32 }
 0x141   :  { %910 = vmatpush3.bf16.msra.mxu1 %v1036_v33 }
 0x142   :  { %911 = vmatprep.subr.bf16.mxu1 %v1037_v34 }
 0x145   :  { %912 = vmatpush3.bf16.msra.mxu1 %v1038_v35 }
 0x146   :  { %913 = vmatprep.subr.bf16.mxu1 %v1039_v36 }
 0x149   :  { %914 = vmatpush3.bf16.msra.mxu1 %v1040_v37 }
 0x1ff   :  { %v600_v39 = vpop.f32.mrb[4].mxu1 }
 0x200   :  { %v602_v41 = vpop.f32.mrb[5].mxu1 }
 0x201   :  { %v604_v43 = vpop.f32.mrb[6].mxu1  ;;  %v557_v44 = vpop.f32.mrb[4].mxu0 }
 0x202   :  { %v606_v45 = vpop.f32.mrb[7].mxu1  ;;  %v558_v46 = vadd.f32 %v557_v44, %v276_v40  ;;  %v559_v47 = vpop.f32.mrb[5].mxu0 }
 0x203   :  { %v560_v48 = vadd.f32 %v559_v47, %v280_v42  ;;  %v561_v49 = vpop.f32.mrb[6].mxu0 }
 0x204   :  { %v601_v50 = vadd.f32 %v600_v39, %v558_v46  ;;  %v562_v51 = vadd.f32 %v561_v49, %v276_v40  ;;  %v563_v52 = vpop.f32.mrb[7].mxu0 }
 0x205   :  { %v603_v53 = vadd.f32 %v602_v41, %v560_v48  ;;  %v564_v54 = vadd.f32 %v563_v52, %v280_v42 }
 0x206   :  { %v605_v57 = vadd.f32 %v604_v43, %v562_v51  ;;  %v609_v61 = vmax.f32 %v601_v50, 0.0 }
 0x207   :  { %v607_v58 = vadd.f32 %v606_v45, %v564_v54  ;;  %v610_v62 = vmax.f32 %v603_v53, 0.0 }
 0x208   :  { %v611_v59 = vmax.f32 %v605_v57, 0.0 }
 0x209   :  { %v612_v63 = vmax.f32 %v607_v58, 0.0 }
 0x20a   :  { %v613_v56 = vpack.c.bf16 %v611_v59, %v609_v61 }
 0x20b   :  { %v614_v60 = vpack.c.bf16 %v612_v63, %v610_v62 }
 0x20d   :  { %782 = vmatprep.mubr.bf16.mxu1 %v614_v60 }
 0x20e   :  { %783 = vmatmul.mubr.bf16.vlgmr.msra.gmra.mrb[8].mxu1 %v613_v56 }
 0x2e1   :  { %v915_v0 = vpop.f32.mrb[8].mxu1 }
 0x2e2   :  { %v916_v2 = vpop.f32.mrb[9].mxu1 }
 0x2e3   :  { %v917_v4 = vadd.f32 %v916_v2, %v915_v0  ;;  %v918_v5 = vpop.f32.mrb[10].mxu1 }
 0x2e4   :  { %v919_v6 = vpop.f32.mrb[11].mxu1 }
 0x2e5   :  { %v785_v7 = vadd.f32 %v917_v4, %v878_v1  ;;  %v920_v8 = vadd.f32 %v919_v6, %v918_v5 }
 0x2e7   :  { %v794_v9 = vmul.f32 0.5, %v785_v7  ;;  %v788_v10 = vadd.f32 %v920_v8, %v878_v1 }
 0x2e9   :  { %v796_v11 = vsel %vm793_vm2, %v794_v9, %v785_v7  ;;  %v795_v12 = vmul.f32 0.5, %v788_v10 }
 0x2ea   :  { %1041 = vtanh.f32 %v796_v11 }
 0x2eb   :  { %v797_v13 = vsel %vm793_vm2, %v795_v12, %v788_v10 }
 0x2ec   :  { %1043 = vtanh.f32 %v797_v13 }
 0x2f4   :  { %v1042_v14 = vpop.eup %1041 }
 0x2f5   :  { %v800_v15 = vadd.f32 1.0, %v1042_v14  ;;  %v895_v21 = vclamps-f32 %v1042_v14, 0.5 }
 0x2f6   :  { %v1044_v16 = vpop.eup %1043 }
 0x2f7   :  { %v802_v17 = vmul.f32 0.5, %v800_v15  ;;  %v801_v55 = vadd.f32 1.0, %v1044_v16  ;;  %v896_v25 = vclamps-f32 %v1044_v16, 0.5 }
 0x2f9   :  { %v804_v18 = vmax.f32 %v802_v17, 0.0  ;;  %v803_v19 = vmul.f32 0.5, %v801_v55 }
 0x2fb   :  { %v806_v20 = vmin.f32 %v804_v18, 1.0  ;;  %v805_v22 = vmax.f32 %v803_v19, 0.0 }
 0x2fd   :  { %v812_v23 = vsel %vm793_vm2, %v806_v20, %v895_v21  ;;  %v807_v24 = vmin.f32 %v805_v22, 1.0 }
 0x2fe   :  { %815 = vst.msk [vmem:[%s1287_s7] sm:$0xff] %vm814_vm3, %v812_v23 }
 0x2ff   :  { %v813_v26 = vsel %vm793_vm2, %v807_v24, %v896_v25 }
 0x300   :  { %816 = vst.msk [vmem:[%s1287_s7 + $0x8] sm:$0xff] %vm814_vm3, %v813_v26 }
 0x301   :  { %821 = vsyncpa [#allocation3], 1 }
 0x302   :  { %822 = vsyncpa [#allocation5], 1 }
 0x303   :  { %823 = vsyncpa [#allocation8], 1 }

</bundles_post_ra>
